<compile_context>
chip_gen: v5e
topology: v5e:2x2
jax: 0.10.0
libtpu: 0.0.40
codegen_flags: <defaults>
</compile_context>

<pallas_src>
import numpy as np

import jax
import jax.numpy as jnp
from jax.experimental import pallas as pl
from jax.experimental.pallas import tpu as pltpu


def _fad_head_kernel(dt_ref, bdD_ref, d_ref, bdDT_ref, filt_ref, x_ref, out_ref):
    _, C, S, _ = x_ref.shape
    NF = filt_ref.shape[0]          # number of frequency bands (4)

    # (C, S, S) -> (C*S, S): leading-dim merge, no relayout.
    x2 = x_ref[0].reshape(C * S, S)

    # Forward 2-D DCT for all channels in two stacked matmuls:
    #   t1[c*S + j, l] = (X_c @ D^T)[j, l]
    #   f [c*S + i, l] = (D @ X_c @ D^T)[i, l]   via kron(I_C, D) left-multiply
    t1 = jnp.dot(x2, dt_ref[...], preferred_element_type=jnp.float32)
    f = jnp.dot(bdD_ref[...], t1, preferred_element_type=jnp.float32)
    f = jnp.nan_to_num(f, nan=0.0)

    # Apply all 4 band filters (pre-tiled over channels in the wrapper) and
    # stack the filtered spectra along rows: row (i*C + c)*S + r.
    z = (filt_ref[...] * f.reshape(1, C * S, S)).reshape(NF * C * S, S)

    # Inverse 2-D DCT for all (filter, channel) pairs in two stacked matmuls.
    t2 = jnp.dot(z, d_ref[...], preferred_element_type=jnp.float32)
    y = jnp.dot(bdDT_ref[...], t2, preferred_element_type=jnp.float32)
    y = jnp.nan_to_num(y, nan=0.0)

    # Row block (i*C + c) is exactly torch.cat(y_list, dim=1)'s channel order.
    out_ref[0] = y.reshape(NF * C, S, S)


@jax.jit
def fad_head_pallas(x, dct, filt_learnable, filt_base):
    B, C, S, S2 = x.shape
    assert S == S2, "spatial dims must be square"
    NF = filt_base.shape[0]

    D = dct.astype(jnp.float32)
    DT = D.T

    # Wrapper-side parameter folding: learnable filters and channel tiling.
    filt = filt_base + (2.0 * jax.nn.sigmoid(filt_learnable) - 1.0)      # (NF,S,S)
    filt_c = jnp.broadcast_to(filt[:, None, :, :], (NF, C, S, S)) \
                .reshape(NF, C * S, S)                                    # (NF,C*S,S)

    # Block-diagonal DCT operators: turn the per-channel / per-(filter,channel)
    # left-multiplies into single stacked 2-D MXU matmuls (no in-kernel transposes).
    bd_D = jnp.kron(jnp.eye(C, dtype=jnp.float32), D)                    # (C*S, C*S)
    bd_DT = jnp.kron(jnp.eye(NF * C, dtype=jnp.float32), DT)             # (4C*S, 4C*S)

    out = pl.pallas_call(
        _fad_head_kernel,
        out_shape=jax.ShapeDtypeStruct((B, NF * C, S, S), jnp.float32),
        grid=(B,),
        in_specs=[
            pl.BlockSpec((S, S), lambda b: (0, 0)),                      # D^T
            pl.BlockSpec((C * S, C * S), lambda b: (0, 0)),              # kron(I_C, D)
            pl.BlockSpec((S, S), lambda b: (0, 0)),                      # D
            pl.BlockSpec((NF * C * S, NF * C * S), lambda b: (0, 0)),    # kron(I_4C, D^T)
            pl.BlockSpec((NF, C * S, S), lambda b: (0, 0, 0)),           # filters
            pl.BlockSpec((1, C, S, S), lambda b: (b, 0, 0, 0)),          # x
        ],
        out_specs=pl.BlockSpec((1, NF * C, S, S), lambda b: (b, 0, 0, 0)),
        compiler_params=pltpu.CompilerParams(
            dimension_semantics=("parallel",)),
    )(DT, bd_D, D, bd_DT, filt_c, x)
    return out


def fad_head_ref(x, dct, filt_learnable, filt_base):
    """Pure-JAX mirror of the PyTorch FAD_Head.forward (correctness check)."""
    D = dct
    DT = D.T
    x_freq = jnp.einsum('ij,bcjk,kl->bcil', D, x, DT)
    x_freq = jnp.nan_to_num(x_freq, nan=0.0)
    ys = []
    for i in range(filt_base.shape[0]):
        filt = filt_base[i] + (2.0 * jax.nn.sigmoid(filt_learnable[i]) - 1.0)
        x_pass = x_freq * filt
        y = jnp.einsum('ij,bcjk,kl->bcil', DT, x_pass, D)
        y = jnp.nan_to_num(y, nan=0.0)
        ys.append(y)
    out = jnp.concatenate(ys, axis=1)
    return jnp.nan_to_num(out, nan=0.0)


if __name__ == "__main__":
    B, C, S = 2, 3, 16   # small shapes: batch=2, RGB-like channels, img_size=16

    def dct_mat(size):
        m = [[(np.sqrt(1.0 / size) if i == 0 else np.sqrt(2.0 / size))
              * np.cos((j + 0.5) * np.pi * i / size) for j in range(size)]
             for i in range(size)]
        return np.array(m, dtype=np.float32)

    def generate_filter(start, end, size):
        return np.array([[0.0 if i + j > end or i + j <= start else 1.0
                          for j in range(size)] for i in range(size)],
                        dtype=np.float32)

    dct = jnp.asarray(dct_mat(S))
    bands = [(0, S // 16), (S // 16, S // 8), (S // 8, S), (0, S * 2)]
    filt_base = jnp.asarray(np.stack([generate_filter(a, b, S) for a, b in bands]))

    key = jax.random.PRNGKey(0)
    k_filt, k_x = jax.random.split(key)
    # Filter.learnable ~ N(0, 0.1) in the module; deterministic in-script init.
    filt_learnable = jax.random.normal(k_filt, (4, S, S), jnp.float32) * 0.1
    x = jax.random.normal(k_x, (B, C, S, S), jnp.float32)

    out = fad_head_pallas(x, dct, filt_learnable, filt_base)
    jax.block_until_ready(out)

    out_ref = fad_head_ref(x, dct, filt_learnable, filt_base)
    assert out.shape == (B, 4 * C, S, S)
    assert jnp.allclose(out, out_ref, atol=1e-4, rtol=1e-4), "FAD_Head mismatch"

    print("KERNEL_OK")
</pallas_src>

<mosaic_0001>
module attributes {stable_mosaic.version = 11 : i64} {
  func.func @_fad_head_kernel(%arg0: i32, %arg1: memref<16x16xf32, #tpu.memory_space<vmem>>, %arg2: memref<48x48xf32, #tpu.memory_space<vmem>>, %arg3: memref<16x16xf32, #tpu.memory_space<vmem>>, %arg4: memref<192x192xf32, #tpu.memory_space<vmem>>, %arg5: memref<4x48x16xf32, #tpu.memory_space<vmem>>, %arg6: memref<1x3x16x16xf32, #tpu.memory_space<vmem>>, %arg7: memref<1x12x16x16xf32, #tpu.memory_space<vmem>>) attributes {dimension_semantics = [#tpu.dimension_semantics<parallel>], iteration_bounds = array<i64: 2>, scalar_prefetch = 0 : i64, scratch_operands = 0 : i64, tpu.core_type = #tpu.core_type<tc>, window_params = [{pipeline_mode = #tpu.pipeline_mode<synchronous>, transform_indices = @transform_0, window_bounds = array<i64: 16, 16>}, {pipeline_mode = #tpu.pipeline_mode<synchronous>, transform_indices = @transform_1, window_bounds = array<i64: 48, 48>}, {pipeline_mode = #tpu.pipeline_mode<synchronous>, transform_indices = @transform_2, window_bounds = array<i64: 16, 16>}, {pipeline_mode = #tpu.pipeline_mode<synchronous>, transform_indices = @transform_3, window_bounds = array<i64: 192, 192>}, {pipeline_mode = #tpu.pipeline_mode<synchronous>, transform_indices = @transform_4, window_bounds = array<i64: 4, 48, 16>}, {transform_indices = @transform_5, window_bounds = array<i64: 1, 3, 16, 16>}, {transform_indices = @transform_6, window_bounds = array<i64: 1, 12, 16, 16>}]} {
    %c0 = arith.constant 0 : index
    %c0_0 = arith.constant 0 : index
    %c0_1 = arith.constant 0 : index
    %c0_2 = arith.constant 0 : index
    %0 = vector.load %arg6[%c0, %c0_0, %c0_1, %c0_2] : memref<1x3x16x16xf32, #tpu.memory_space<vmem>>, vector<1x3x16x16xf32>
    %1 = vector.shape_cast %0 : vector<1x3x16x16xf32> to vector<3x16x16xf32>
    %2 = vector.shape_cast %1 : vector<3x16x16xf32> to vector<48x16xf32>
    %c0_3 = arith.constant 0 : index
    %c0_4 = arith.constant 0 : index
    %3 = vector.load %arg1[%c0_3, %c0_4] : memref<16x16xf32, #tpu.memory_space<vmem>>, vector<16x16xf32>
    %cst = arith.constant dense<0.000000e+00> : vector<48x16xf32>
    %4 = tpu.matmul %2, %3, %cst {dimension_numbers = #tpu.dot_dimension_numbers<[1], [0], [0], [1], [0, 0, 1, 1], [], []>} : vector<48x16xf32>, vector<16x16xf32>, vector<48x16xf32> -> vector<48x16xf32>
    %c0_5 = arith.constant 0 : index
    %c0_6 = arith.constant 0 : index
    %5 = vector.load %arg2[%c0_5, %c0_6] : memref<48x48xf32, #tpu.memory_space<vmem>>, vector<48x48xf32>
    %cst_7 = arith.constant dense<0.000000e+00> : vector<48x16xf32>
    %6 = tpu.matmul %5, %4, %cst_7 {dimension_numbers = #tpu.dot_dimension_numbers<[1], [0], [0], [1], [0, 0, 1, 1], [], []>} : vector<48x48xf32>, vector<48x16xf32>, vector<48x16xf32> -> vector<48x16xf32>
    %cst_8 = arith.constant 0.000000e+00 : f32
    %7 = arith.cmpf one, %6, %6 : vector<48x16xf32>
    %8 = vector.broadcast %cst_8 : f32 to vector<48x16xf32>
    %9 = arith.select %7, %8, %6 : vector<48x16xi1>, vector<48x16xf32>
    %cst_9 = arith.constant 0x7F800000 : f32
    %10 = vector.broadcast %cst_9 : f32 to vector<48x16xf32>
    %11 = arith.cmpf oeq, %9, %10 : vector<48x16xf32>
    %cst_10 = arith.constant 3.40282347E+38 : f32
    %12 = vector.broadcast %cst_10 : f32 to vector<48x16xf32>
    %13 = arith.select %11, %12, %9 : vector<48x16xi1>, vector<48x16xf32>
    %cst_11 = arith.constant 0xFF800000 : f32
    %14 = vector.broadcast %cst_11 : f32 to vector<48x16xf32>
    %15 = arith.cmpf oeq, %13, %14 : vector<48x16xf32>
    %cst_12 = arith.constant -3.40282347E+38 : f32
    %16 = vector.broadcast %cst_12 : f32 to vector<48x16xf32>
    %17 = arith.select %15, %16, %13 : vector<48x16xi1>, vector<48x16xf32>
    %c0_13 = arith.constant 0 : index
    %c0_14 = arith.constant 0 : index
    %c0_15 = arith.constant 0 : index
    %18 = vector.load %arg5[%c0_13, %c0_14, %c0_15] : memref<4x48x16xf32, #tpu.memory_space<vmem>>, vector<4x48x16xf32>
    %19 = vector.shape_cast %17 : vector<48x16xf32> to vector<1x48x16xf32>
    %20 = vector.broadcast %19 : vector<1x48x16xf32> to vector<4x48x16xf32>
    %21 = arith.mulf %18, %20 : vector<4x48x16xf32>
    %22 = vector.shape_cast %21 : vector<4x48x16xf32> to vector<192x16xf32>
    %c0_16 = arith.constant 0 : index
    %c0_17 = arith.constant 0 : index
    %23 = vector.load %arg3[%c0_16, %c0_17] : memref<16x16xf32, #tpu.memory_space<vmem>>, vector<16x16xf32>
    %cst_18 = arith.constant dense<0.000000e+00> : vector<192x16xf32>
    %24 = tpu.matmul %22, %23, %cst_18 {dimension_numbers = #tpu.dot_dimension_numbers<[1], [0], [0], [1], [0, 0, 1, 1], [], []>} : vector<192x16xf32>, vector<16x16xf32>, vector<192x16xf32> -> vector<192x16xf32>
    %c0_19 = arith.constant 0 : index
    %c0_20 = arith.constant 0 : index
    %25 = vector.load %arg4[%c0_19, %c0_20] : memref<192x192xf32, #tpu.memory_space<vmem>>, vector<192x192xf32>
    %cst_21 = arith.constant dense<0.000000e+00> : vector<192x16xf32>
    %26 = tpu.matmul %25, %24, %cst_21 {dimension_numbers = #tpu.dot_dimension_numbers<[1], [0], [0], [1], [0, 0, 1, 1], [], []>} : vector<192x192xf32>, vector<192x16xf32>, vector<192x16xf32> -> vector<192x16xf32>
    %cst_22 = arith.constant 0.000000e+00 : f32
    %27 = arith.cmpf one, %26, %26 : vector<192x16xf32>
    %28 = vector.broadcast %cst_22 : f32 to vector<192x16xf32>
    %29 = arith.select %27, %28, %26 : vector<192x16xi1>, vector<192x16xf32>
    %cst_23 = arith.constant 0x7F800000 : f32
    %30 = vector.broadcast %cst_23 : f32 to vector<192x16xf32>
    %31 = arith.cmpf oeq, %29, %30 : vector<192x16xf32>
    %cst_24 = arith.constant 3.40282347E+38 : f32
    %32 = vector.broadcast %cst_24 : f32 to vector<192x16xf32>
    %33 = arith.select %31, %32, %29 : vector<192x16xi1>, vector<192x16xf32>
    %cst_25 = arith.constant 0xFF800000 : f32
    %34 = vector.broadcast %cst_25 : f32 to vector<192x16xf32>
    %35 = arith.cmpf oeq, %33, %34 : vector<192x16xf32>
    %cst_26 = arith.constant -3.40282347E+38 : f32
    %36 = vector.broadcast %cst_26 : f32 to vector<192x16xf32>
    %37 = arith.select %35, %36, %33 : vector<192x16xi1>, vector<192x16xf32>
    %38 = vector.shape_cast %37 : vector<192x16xf32> to vector<12x16x16xf32>
    %c0_27 = arith.constant 0 : index
    %c0_28 = arith.constant 0 : index
    %c0_29 = arith.constant 0 : index
    %c0_30 = arith.constant 0 : index
    %39 = vector.load %arg7[%c0_27, %c0_28, %c0_29, %c0_30] : memref<1x12x16x16xf32, #tpu.memory_space<vmem>>, vector<1x12x16x16xf32>
    %40 = vector.shape_cast %39 : vector<1x12x16x16xf32> to vector<12x16x16xf32>
    %41 = vector.shape_cast %38 : vector<12x16x16xf32> to vector<1x12x16x16xf32>
    tpu.vector_store %arg7[%c0_27, %c0_28, %c0_29, %c0_30], %41 {strides = array<i32>} : memref<1x12x16x16xf32, #tpu.memory_space<vmem>>, vector<1x12x16x16xf32>,
    return
  }
  func.func @transform_0(%arg0: i32) -> (i32, i32) {
    %c0_i32 = arith.constant 0 : i32
    %c0_i32_0 = arith.constant 0 : i32
    %c0_i32_1 = arith.constant 0 : i32
    return %c0_i32, %c0_i32_0 : i32, i32
  }
  func.func @transform_1(%arg0: i32) -> (i32, i32) {
    %c0_i32 = arith.constant 0 : i32
    %c0_i32_0 = arith.constant 0 : i32
    %c0_i32_1 = arith.constant 0 : i32
    return %c0_i32, %c0_i32_0 : i32, i32
  }
  func.func @transform_2(%arg0: i32) -> (i32, i32) {
    %c0_i32 = arith.constant 0 : i32
    %c0_i32_0 = arith.constant 0 : i32
    %c0_i32_1 = arith.constant 0 : i32
    return %c0_i32, %c0_i32_0 : i32, i32
  }
  func.func @transform_3(%arg0: i32) -> (i32, i32) {
    %c0_i32 = arith.constant 0 : i32
    %c0_i32_0 = arith.constant 0 : i32
    %c0_i32_1 = arith.constant 0 : i32
    return %c0_i32, %c0_i32_0 : i32, i32
  }
  func.func @transform_4(%arg0: i32) -> (i32, i32, i32) {
    %c0_i32 = arith.constant 0 : i32
    %c0_i32_0 = arith.constant 0 : i32
    %c0_i32_1 = arith.constant 0 : i32
    %c0_i32_2 = arith.constant 0 : i32
    return %c0_i32, %c0_i32_0, %c0_i32_1 : i32, i32, i32
  }
  func.func @transform_5(%arg0: i32) -> (i32, i32, i32, i32) {
    %c0_i32 = arith.constant 0 : i32
    %c0_i32_0 = arith.constant 0 : i32
    %c0_i32_1 = arith.constant 0 : i32
    %c0_i32_2 = arith.constant 0 : i32
    return %arg0, %c0_i32, %c0_i32_0, %c0_i32_1 : i32, i32, i32, i32
  }
  func.func @transform_6(%arg0: i32) -> (i32, i32, i32, i32) {
    %c0_i32 = arith.constant 0 : i32
    %c0_i32_0 = arith.constant 0 : i32
    %c0_i32_1 = arith.constant 0 : i32
    %c0_i32_2 = arith.constant 0 : i32
    return %arg0, %c0_i32, %c0_i32_0, %c0_i32_1 : i32, i32, i32, i32
  }
}

</mosaic_0001>

<bundles_post_ra>
// kernel: fad_head_pallas.1
= control target key start
LH: loop header
LB: loop body
LE: loop exit
PB: predicated region body
PF: predicated region fallthrough
CT: control target
= control target key end

     0   :  { %11 = vsyncpa [#allocation3], 0  ;;  %s1919_s0 = inlined_call_operand.vmem [shape: f32[16,16], index: 0, kind: input, shape index: {}]   ;;  %s1920_s1 = inlined_call_operand.vmem [shape: f32[48,48], index: 1, kind: input, shape index: {}]   ;;  %s1921_s2 = inlined_call_operand.vmem [shape: f32[16,16], index: 2, kind: input, shape index: {}]   ;;  %s1922_s3 = inlined_call_operand.vmem [shape: f32[192,192], index: 3, kind: input, shape index: {}]   ;;  %s1923_s4 = inlined_call_operand.vmem [shape: f32[4,48,16], index: 4, kind: input, shape index: {}]   ;;  %s1924_s5 = inlined_call_operand.vmem [shape: f32[2,3,16,16], index: 5, kind: input, shape index: {}]   ;;  %s1925_s6 = inlined_call_operand.hbm [shape: f32[2,12,16,16], index: 6, kind: output, shape index: {}]  }
   0x1   :  { %13 = vsyncpa [#allocation3 + $0x1], 0  ;;  %s1401_s21 = smov 0   ;;  %s1403_s22 = smov 0  }
   0x2   :  { %s1405_s23 = smov 0   ;;  %s1407_s24 = smov 0  }
   0x3 LB: > { %s1422_s25 = sadd.s32 4294967295, %s1362_s24   ;;  %s1164_s26 = sadd.s32 4294967294, %s1362_s24   ;;  %s1362_s24 = sphi %s1407_s24, %s1931_s24   ;;  %s1358_s23 = sphi %s1405_s23, %s1930_s23   ;;  %s1354_s22 = sphi %s1403_s22, %s1929_s22   ;;  %s1350_s21 = sphi %s1401_s21, %s1928_s21  }
   0x4   : > { %s1426_s27 = sadd.s32 1, %s1362_s24   ;;  %s157_s28 = sadd.s32 1, %s1358_s23 }
   0x5   : > { %s154_s29 = ssub.s32 %s1362_s24, %s1426_s27  ;;  %p167_p0 = scmp.ne.s32.totalorder %s1358_s23, %s1354_s22 }
   0x6   : > { %p155_p1 = scmp.eq.s32.totalorder %s154_s29, 0  ;;  %p168_p2 = scmp.eq.s32.totalorder %s1422_s25, 1 }
   0x7   : > { %p173_p3 = scmp.ne.s32.totalorder %s1354_s22, %s1350_s21  ;;  %p174_p4 = scmp.eq.s32.totalorder %s1164_s26, 1 }
   0x8   : > { %s1437_s30 = scalar_select %p155_p1, %s1358_s23, %s157_s28  }
   0x9   : > { %p1439_p5 = por %p168_p2, %p167_p0  ;;  %p1443_p6 = por %p174_p4, %p173_p3 }
   0xa   : > { %p1167_p7 = scmp.ge.s32.totalorder %s1362_s24, 1  ;;  %p215_p8 = scmp.lt.s32.totalorder %s1362_s24, 3 }
   0xc   : > { %p216_p9 = pnand %p1167_p7, %p215_p8 }
   0xd   : > { %p245_p10 = scmp.lt.s32.totalorder (!%p216_p9), %s1422_s25, 1  ;;  %s242_s11 = sand.u32 (!%p216_p9), 1, %s1354_s22  }
   0xe   : > { %219 = sbr.rel (%p216_p9) target bundleno = 933 (0x3a5), region = 44  ;;  %s1320_s12 = scalar_lea.hbm (!%p216_p9), %s1925_s6, 384 }
   0xf   : > { %s1258_s16 = smul.u32 (!%p216_p9), 192, %s1422_s25 }
  0x11   : > { %s1098_s19 = scalar_lea.hbm (!%p216_p9), %s1925_s6, %s1258_s16 }
  0x12   : > { %s1101_s26 = sshll.u32 (!%p216_p9), %s1098_s19, 4  ;;  %s1102_s26 = int_to_ptr.hbm [resolvable:$true] %s1101_s26 }
  0x13   : > { %v257_v0 = vld [vmem:[%s1919_s0 + $0x8] sm:$0xff]  ;;  %v256_v1 = vld [vmem:[%s1919_s0] sm:$0xff]  ;;  %s246_s13 = scalar_select %p245_p10, %s1422_s25, 1  ;;  %vm258_vm0 = vcmask 130048   ;;  %vm318_vm1 = vcmask 392192   ;;  %v314_v16 = vld [vmem:[%s1920_s1 + $0x10] sm:$0xff] }
  0x14   : > { %291 = vmatpush.msra.mxu0 %v257_v0  ;;  %v312_v14 = vld [vmem:[%s1920_s1] sm:$0xff]  ;;  %v313_v15 = vld [vmem:[%s1920_s1 + $0x8] sm:$0xff]  ;;  %v315_v17 = vld [vmem:[%s1920_s1 + $0x18] sm:$0xff]  ;;  %s1087_s25 = scalar_lea.sflag [#allocation3], %s242_s11  ;;  %s1314_s28 = sshra.s32 %s1102_s26, 4  ;;  %s1315_s28 = int_to_ptr.hbm [resolvable:$true] %s1314_s28 }
  0x15   : > { %s1257_s14 = smul.u32 48, %s246_s13  ;;  %v316_v18 = vld [vmem:[%s1920_s1 + $0x20] sm:$0xff]  ;;  %v317_v19 = vld [vmem:[%s1920_s1 + $0x28] sm:$0xff]  ;;  %v410_v37 = vld [vmem:[%s1923_s4 + $0x10] sm:$0xff]  ;;  %s1316_s29 = scalar_lea.hbm %s1315_s28, 192 }
  0x16   : > { %292 = vmatpush.msra.mxu0 %v256_v1  ;;  %v457_v20 = vld [vmem:[%s1921_s2 + $0x8] sm:$0xff]  ;;  %v456_v21 = vld [vmem:[%s1921_s2] sm:$0xff]  ;;  %v411_v43 = vld [vmem:[%s1923_s4 + $0x18] sm:$0xff]  ;;  %p1317_p11 = scmp.ne.s32.totalorder %s1315_s28, %s1316_s29  ;;  %p1321_p0 = scmp.lt.s32.totalorder %s1315_s28, %s1925_s6 }
  0x17   : > { %s249_s17 = scalar_lea.vmem %s1924_s5, %s1257_s14  ;;  %544 = vmatpush.msra.mxu2 %v457_v20  ;;  %v408_v25 = vld [vmem:[%s1923_s4] sm:$0xff]  ;;  %v409_v31 = vld [vmem:[%s1923_s4 + $0x8] sm:$0xff]  ;;  %v414_v58 = vld [vmem:[%s1923_s4 + $0x30] sm:$0xff]  ;;  %s1256_s14 = smul.u32 192, %s242_s11 }
  0x18   : > { %v250_v2 = vld [vmem:[%s249_s17] sm:$0xff]  ;;  %v251_v3 = vld [vmem:[%s249_s17 + $0x8] sm:$0xff]  ;;  %v252_v4 = vld [vmem:[%s249_s17 + $0x10] sm:$0xff]  ;;  %p1318_p12 = pnand %p1317_p11, %p1439_p5  ;;  %p1322_p1 = scmp.lt.s32.totalorder %s1320_s12, %s1316_s29 }
  0x19   : > { %1169 = vmatmul.msk.f32.vlgmr.msra.gmra.mxu0 %vm258_vm0, %v250_v2  ;;  %v253_v5 = vld [vmem:[%s249_s17 + $0x18] sm:$0xff]  ;;  %v254_v6 = vld [vmem:[%s249_s17 + $0x20] sm:$0xff]  ;;  %v255_v7 = vld [vmem:[%s249_s17 + $0x28] sm:$0xff]  ;;  %545 = vmatpush.msra.mxu2 %v456_v21  ;;  %s1813_s15 = scalar_lea.vmem [#allocation2], %s1256_s14 }
  0x1a   : > { %v412_v49 = vld [vmem:[%s1923_s4 + $0x20] sm:$0xff]  ;;  %v413_v55 = vld [vmem:[%s1923_s4 + $0x28] sm:$0xff]  ;;  %v415_v60 = vld [vmem:[%s1923_s4 + $0x38] sm:$0xff]  ;;  %s1099_s20 = sshll.u32 %s1813_s15, 4  ;;  %p1319_p13 = pneg %p1318_p12  ;;  %s1100_s20 = int_to_ptr.vmem [resolvable:$true] %s1099_s20 }
  0x1b   : > { %v416_v62 = vld [vmem:[%s1923_s4 + $0x40] sm:$0xff]  ;;  %v417_v0 = vld [vmem:[%s1923_s4 + $0x48] sm:$0xff]  ;;  %v418_v2 = vld [vmem:[%s1923_s4 + $0x50] sm:$0xff]  ;;  %p1323_p2 = por %p1322_p1, %p1321_p0 }
  0x1c   : > { %v426_v20 = vld [vmem:[%s1923_s4 + $0x90] sm:$0xff] }
  0x1d   : > { %p1324_p3 = pnand %p1323_p2, %p1319_p13 }
  0x21   : > { %1170 = vmatmul.msk.f32.gmra.mxu0 %vm258_vm0, %v251_v3 }
  0x29   : > { %1171 = vmatmul.msk.f32.gmra.mxu0 %vm258_vm0, %v252_v4  ;;  %v419_v4 = vld [vmem:[%s1923_s4 + $0x58] sm:$0xff] }
  0x31   : > { %1172 = vmatmul.msk.f32.gmra.mxu0 %vm258_vm0, %v253_v5 }
  0x39   : > { %1173 = vmatmul.msk.f32.gmra.mxu0 %vm258_vm0, %v254_v6  ;;  %v420_v6 = vld [vmem:[%s1923_s4 + $0x60] sm:$0xff] }
  0x41   : > { %1174 = vmatmul.msk.f32.gmra.mxu0 %vm258_vm0, %v255_v7 }
  0x96   : > { %v294_v8 = vpop.f32.mrf.mxu0 }
  0x9e   : > { %v297_v9 = vpop.f32.mrf.mxu0 }
  0xa6   : > { %v300_v10 = vpop.f32.mrf.mxu0 }
  0xae   : > { %v303_v11 = vpop.f32.mrf.mxu0 }
  0xb6   : > { %v306_v12 = vpop.f32.mrf.mxu0 }
  0xbe   : > { %v309_v13 = vpop.f32.mrf.mxu0 }
  0xbf   : > { %347 = vmatpush.msra.mxu1 %v309_v13 }
  0xc1   : > { %348 = vmatpush.msra.mxu1 %v306_v12  ;;  %v423_v12 = vld [vmem:[%s1923_s4 + $0x78] sm:$0xff] }
  0xc3   : > { %349 = vmatpush.msra.mxu1 %v303_v11 }
  0xc5   : > { %350 = vmatpush.msra.mxu1 %v300_v10  ;;  %v422_v10 = vld [vmem:[%s1923_s4 + $0x70] sm:$0xff] }
  0xc7   : > { %351 = vmatpush.msra.mxu1 %v297_v9 }
  0xc9   : > { %352 = vmatpush.msra.mxu1 %v294_v8  ;;  %v421_v8 = vld [vmem:[%s1923_s4 + $0x68] sm:$0xff] }
  0xca   : > { %1175 = vmatmul.msk.f32.vlgmr.msra.gmra.mxu1 %vm318_vm1, %v312_v14  ;;  %v424_v14 = vld [vmem:[%s1923_s4 + $0x80] sm:$0xff] }
  0xd2   : > { %1176 = vmatmul.msk.f32.gmra.mxu1 %vm318_vm1, %v313_v15 }
  0xda   : > { %1177 = vmatmul.msk.f32.gmra.mxu1 %vm318_vm1, %v314_v16 }
  0xe2   : > { %1178 = vmatmul.msk.f32.gmra.mxu1 %vm318_vm1, %v315_v17  ;;  %v425_v17 = vld [vmem:[%s1923_s4 + $0x88] sm:$0xff] }
  0xea   : > { %1179 = vmatmul.msk.f32.gmra.mxu1 %vm318_vm1, %v316_v18 }
  0xf2   : > { %1180 = vmatmul.msk.f32.gmra.mxu1 %vm318_vm1, %v317_v19 }
 0x147   : > { %v354_v22 = vpop.f32.mrf.mxu1 }
 0x148   : > { %vm372_vm2 = vcmp.ne.f32.partialorder %v354_v22, %v354_v22 }
 0x149   : > { %v378_v23 = vsel %vm372_vm2, 0.0, %v354_v22 }
 0x14a   : > { %vm384_vm3 = vcmp.eq.f32.partialorder %v378_v23, inf }
 0x14b   : > { %v390_v24 = vsel %vm384_vm3, 3.4028235e+38, %v378_v23  ;;  %v427_v23 = vld [vmem:[%s1923_s4 + $0x98] sm:$0xff] }
 0x14c   : > { %vm396_vm4 = vcmp.eq.f32.partialorder %v390_v24, -inf }
 0x14d   : > { %v1493_v26 = vsel %vm396_vm4, -3.4028235e+38, %v390_v24 }
 0x14e   : > { %v432_v27 = vmul.f32 %v408_v25, %v1493_v26  ;;  %v438_v59 = vmul.f32 %v414_v58, %v1493_v26  ;;  %v444_v7 = vmul.f32 %v420_v6, %v1493_v26  ;;  %v450_v21 = vmul.f32 %v426_v20, %v1493_v26  ;;  %v645_v6 = vld [vmem:[%s1922_s3 + $0xd0] sm:$0xff]  ;;  %v636_v20 = vld [vmem:[%s1922_s3 + $0x88] sm:$0xff] }
 0x14f   : > { %v357_v28 = vpop.f32.mrf.mxu1 }
 0x150   : > { %vm373_vm5 = vcmp.ne.f32.partialorder %v357_v28, %v357_v28  ;;  %1181 = vmatmul.msk.f32.vlgmr.msra.gmra.mxu2 %vm258_vm0, %v432_v27  ;;  %v428_v27 = vld [vmem:[%s1923_s4 + $0xa0] sm:$0xff] }
 0x151   : > { %v379_v29 = vsel %vm373_vm5, 0.0, %v357_v28  ;;  %vm667_vm5 = vcmask 523264  }
 0x152   : > { %vm385_vm6 = vcmp.eq.f32.partialorder %v379_v29, inf }
 0x153   : > { %v391_v30 = vsel %vm385_vm6, 3.4028235e+38, %v379_v29  ;;  %v429_v29 = vld [vmem:[%s1923_s4 + $0xa8] sm:$0xff] }
 0x154   : > { %vm397_vm7 = vcmp.eq.f32.partialorder %v391_v30, -inf }
 0x155   : > { %v1500_v32 = vsel %vm397_vm7, -3.4028235e+38, %v391_v30 }
 0x156   : > { %v433_v33 = vmul.f32 %v409_v31, %v1500_v32  ;;  %v439_v61 = vmul.f32 %v415_v60, %v1500_v32  ;;  %v445_v9 = vmul.f32 %v421_v8, %v1500_v32  ;;  %v451_v24 = vmul.f32 %v427_v23, %v1500_v32  ;;  %v430_v32 = vld [vmem:[%s1923_s4 + $0xb0] sm:$0xff]  ;;  %v623_v60 = vld [vmem:[%s1922_s3 + $0x20] sm:$0xff]  ;;  %v638_v23 = vld [vmem:[%s1922_s3 + $0x98] sm:$0xff] }
 0x157   : > { %v360_v34 = vpop.f32.mrf.mxu1  ;;  %v647_v8 = vld [vmem:[%s1922_s3 + $0xe0] sm:$0xff] }
 0x158   : > { %vm374_vm8 = vcmp.ne.f32.partialorder %v360_v34, %v360_v34  ;;  %1182 = vmatmul.msk.f32.gmra.mxu2 %vm258_vm0, %v433_v33 }
 0x159   : > { %v380_v35 = vsel %vm374_vm8, 0.0, %v360_v34 }
 0x15a   : > { %vm386_vm9 = vcmp.eq.f32.partialorder %v380_v35, inf }
 0x15b   : > { %v392_v36 = vsel %vm386_vm9, 3.4028235e+38, %v380_v35  ;;  %v431_v35 = vld [vmem:[%s1923_s4 + $0xb8] sm:$0xff] }
 0x15c   : > { %vm398_vm10 = vcmp.eq.f32.partialorder %v392_v36, -inf }
 0x15d   : > { %v1507_v38 = vsel %vm398_vm10, -3.4028235e+38, %v392_v36 }
 0x15e   : > { %v434_v39 = vmul.f32 %v410_v37, %v1507_v38  ;;  %v440_v63 = vmul.f32 %v416_v62, %v1507_v38  ;;  %v446_v11 = vmul.f32 %v422_v10, %v1507_v38  ;;  %v452_v28 = vmul.f32 %v428_v27, %v1507_v38  ;;  %v639_v62 = vld [vmem:[%s1922_s3 + $0xa0] sm:$0xff]  ;;  %v649_v10 = vld [vmem:[%s1922_s3 + $0xf0] sm:$0xff]  ;;  %v640_v27 = vld [vmem:[%s1922_s3 + $0xa8] sm:$0xff] }
 0x15f   : > { %v363_v40 = vpop.f32.mrf.mxu1 }
 0x160   : > { %vm375_vm11 = vcmp.ne.f32.partialorder %v363_v40, %v363_v40  ;;  %1183 = vmatmul.msk.f32.gmra.mxu2 %vm258_vm0, %v434_v39 }
 0x161   : > { %v381_v41 = vsel %vm375_vm11, 0.0, %v363_v40 }
 0x162   : > { %vm387_vm12 = vcmp.eq.f32.partialorder %v381_v41, inf }
 0x163   : > { %v393_v42 = vsel %vm387_vm12, 3.4028235e+38, %v381_v41 }
 0x164   : > { %vm399_vm13 = vcmp.eq.f32.partialorder %v393_v42, -inf }
 0x165   : > { %v1514_v44 = vsel %vm399_vm13, -3.4028235e+38, %v393_v42 }
 0x166   : > { %v435_v45 = vmul.f32 %v411_v43, %v1514_v44  ;;  %v441_v1 = vmul.f32 %v417_v0, %v1514_v44  ;;  %v447_v13 = vmul.f32 %v423_v12, %v1514_v44  ;;  %v453_v30 = vmul.f32 %v429_v29, %v1514_v44  ;;  %v620_v0 = vld [vmem:[%s1922_s3 + $0x8] sm:$0xff]  ;;  %v651_v12 = vld [vmem:[%s1922_s3 + $0x100] sm:$0xff] }
 0x167   : > { %v366_v46 = vpop.f32.mrf.mxu1  ;;  %v664_v29 = vld [vmem:[%s1922_s3 + $0x168] sm:$0xff] }
 0x168   : > { %vm376_vm14 = vcmp.ne.f32.partialorder %v366_v46, %v366_v46  ;;  %1184 = vmatmul.msk.f32.gmra.mxu2 %vm258_vm0, %v435_v45 }
 0x169   : > { %v382_v47 = vsel %vm376_vm14, 0.0, %v366_v46 }
 0x16a   : > { %vm388_vm15 = vcmp.eq.f32.partialorder %v382_v47, inf }
 0x16b   : > { %v394_v48 = vsel %vm388_vm15, 3.4028235e+38, %v382_v47 }
 0x16c   : > { %vm400_vm1 = vcmp.eq.f32.partialorder %v394_v48, -inf }
 0x16d   : > { %v1521_v50 = vsel %vm400_vm1, -3.4028235e+38, %v394_v48 }
 0x16e   : > { %v436_v51 = vmul.f32 %v412_v49, %v1521_v50  ;;  %v442_v3 = vmul.f32 %v418_v2, %v1521_v50  ;;  %v448_v15 = vmul.f32 %v424_v14, %v1521_v50  ;;  %v454_v33 = vmul.f32 %v430_v32, %v1521_v50  ;;  %v629_v49 = vld [vmem:[%s1922_s3 + $0x50] sm:$0xff]  ;;  %v627_v2 = vld [vmem:[%s1922_s3 + $0x40] sm:$0xff]  ;;  %v632_v14 = vld [vmem:[%s1922_s3 + $0x68] sm:$0xff] }
 0x16f   : > { %v369_v52 = vpop.f32.mrf.mxu1 }
 0x170   : > { %vm377_vm2 = vcmp.ne.f32.partialorder %v369_v52, %v369_v52  ;;  %1185 = vmatmul.msk.f32.gmra.mxu2 %vm258_vm0, %v436_v51  ;;  %v631_v51 = vld [vmem:[%s1922_s3 + $0x60] sm:$0xff] }
 0x171   : > { %v383_v53 = vsel %vm377_vm2, 0.0, %v369_v52 }
 0x172   : > { %vm389_vm3 = vcmp.eq.f32.partialorder %v383_v53, inf }
 0x173   : > { %v395_v54 = vsel %vm389_vm3, 3.4028235e+38, %v383_v53  ;;  %v633_v53 = vld [vmem:[%s1922_s3 + $0x70] sm:$0xff] }
 0x174   : > { %vm401_vm4 = vcmp.eq.f32.partialorder %v395_v54, -inf }
 0x175   : > { %v407_v56 = vsel %vm401_vm4, -3.4028235e+38, %v395_v54  ;;  %v619_v54 = vld [vmem:[%s1922_s3] sm:$0xff] }
 0x176   : > { %v437_v57 = vmul.f32 %v413_v55, %v407_v56  ;;  %v443_v5 = vmul.f32 %v419_v4, %v407_v56  ;;  %v449_v18 = vmul.f32 %v425_v17, %v407_v56  ;;  %v455_v36 = vmul.f32 %v431_v35, %v407_v56  ;;  %v635_v56 = vld [vmem:[%s1922_s3 + $0x80] sm:$0xff]  ;;  %v634_v17 = vld [vmem:[%s1922_s3 + $0x78] sm:$0xff]  ;;  %v665_v35 = vld [vmem:[%s1922_s3 + $0x170] sm:$0xff] }
 0x177   : > { %v643_v4 = vld [vmem:[%s1922_s3 + $0xc0] sm:$0xff] }
 0x178   : > { %1186 = vmatmul.msk.f32.gmra.mxu2 %vm258_vm0, %v437_v57  ;;  %v621_v57 = vld [vmem:[%s1922_s3 + $0x10] sm:$0xff] }
 0x180   : > { %1187 = vmatmul.msk.f32.gmra.mxu2 %vm258_vm0, %v438_v59  ;;  %v637_v59 = vld [vmem:[%s1922_s3 + $0x90] sm:$0xff] }
 0x188   : > { %1188 = vmatmul.msk.f32.gmra.mxu2 %vm258_vm0, %v439_v61 }
 0x190   : > { %1189 = vmatmul.msk.f32.gmra.mxu2 %vm258_vm0, %v440_v63  ;;  %v625_v63 = vld [vmem:[%s1922_s3 + $0x30] sm:$0xff] }
 0x198   : > { %1190 = vmatmul.msk.f32.gmra.mxu2 %vm258_vm0, %v441_v1  ;;  %v641_v1 = vld [vmem:[%s1922_s3 + $0xb0] sm:$0xff] }
 0x1a0   : > { %1191 = vmatmul.msk.f32.gmra.mxu2 %vm258_vm0, %v442_v3  ;;  %v622_v3 = vld [vmem:[%s1922_s3 + $0x18] sm:$0xff] }
 0x1a8   : > { %1192 = vmatmul.msk.f32.gmra.mxu2 %vm258_vm0, %v443_v5  ;;  %v624_v5 = vld [vmem:[%s1922_s3 + $0x28] sm:$0xff] }
 0x1b0   : > { %1193 = vmatmul.msk.f32.gmra.mxu2 %vm258_vm0, %v444_v7  ;;  %v626_v7 = vld [vmem:[%s1922_s3 + $0x38] sm:$0xff] }
 0x1b8   : > { %1194 = vmatmul.msk.f32.gmra.mxu2 %vm258_vm0, %v445_v9  ;;  %v628_v9 = vld [vmem:[%s1922_s3 + $0x48] sm:$0xff] }
 0x1c0   : > { %1195 = vmatmul.msk.f32.gmra.mxu2 %vm258_vm0, %v446_v11  ;;  %v630_v11 = vld [vmem:[%s1922_s3 + $0x58] sm:$0xff] }
 0x1c8   : > { %1196 = vmatmul.msk.f32.gmra.mxu2 %vm258_vm0, %v447_v13  ;;  %v654_v13 = vld [vmem:[%s1922_s3 + $0x118] sm:$0xff] }
 0x1d0   : > { %1197 = vmatmul.msk.f32.gmra.mxu2 %vm258_vm0, %v448_v15  ;;  %v653_v15 = vld [vmem:[%s1922_s3 + $0x110] sm:$0xff] }
 0x1d3   : > { %v1583_v16 = vpop.f32.mrf.mxu2 }
 0x1d8   : > { %1198 = vmatmul.msk.f32.gmra.mxu2 %vm258_vm0, %v449_v18  ;;  %v655_v18 = vld [vmem:[%s1922_s3 + $0x120] sm:$0xff] }
 0x1db   : > { %v1589_v19 = vpop.f32.mrf.mxu2 }
 0x1e0   : > { %1199 = vmatmul.msk.f32.gmra.mxu2 %vm258_vm0, %v450_v21  ;;  %v657_v21 = vld [vmem:[%s1922_s3 + $0x130] sm:$0xff] }
 0x1e3   : > { %v553_v22 = vpop.f32.mrf.mxu2 }
 0x1e8   : > { %1200 = vmatmul.msk.f32.gmra.mxu2 %vm258_vm0, %v451_v24  ;;  %v659_v24 = vld [vmem:[%s1922_s3 + $0x140] sm:$0xff] }
 0x1eb   : > { %v556_v25 = vpop.f32.mrf.mxu2 }
 0x1f0   : > { %1201 = vmatmul.msk.f32.gmra.mxu2 %vm258_vm0, %v452_v28  ;;  %v661_v28 = vld [vmem:[%s1922_s3 + $0x150] sm:$0xff] }
 0x1f3   : > { %v559_v26 = vpop.f32.mrf.mxu2 }
 0x1f8   : > { %1202 = vmatmul.msk.f32.gmra.mxu2 %vm258_vm0, %v453_v30  ;;  %v642_v30 = vld [vmem:[%s1922_s3 + $0xb8] sm:$0xff] }
 0x1fb   : > { %v562_v31 = vpop.f32.mrf.mxu2 }
 0x200   : > { %1203 = vmatmul.msk.f32.gmra.mxu2 %vm258_vm0, %v454_v33  ;;  %v666_v33 = vld [vmem:[%s1922_s3 + $0x178] sm:$0xff] }
 0x203   : > { %v565_v34 = vpop.f32.mrf.mxu2 }
 0x208   : > { %1204 = vmatmul.msk.f32.gmra.mxu2 %vm258_vm0, %v455_v36 }
 0x20b   : > { %v568_v37 = vpop.f32.mrf.mxu2 }
 0x213   : > { %v571_v38 = vpop.f32.mrf.mxu2 }
 0x21b   : > { %v574_v39 = vpop.f32.mrf.mxu2 }
 0x223   : > { %v577_v40 = vpop.f32.mrf.mxu2 }
 0x22b   : > { %v580_v41 = vpop.f32.mrf.mxu2 }
 0x233   : > { %v583_v42 = vpop.f32.mrf.mxu2 }
 0x23b   : > { %v586_v43 = vpop.f32.mrf.mxu2 }
 0x243   : > { %v589_v44 = vpop.f32.mrf.mxu2 }
 0x24b   : > { %v592_v45 = vpop.f32.mrf.mxu2 }
 0x24c   : > { %740 = vmatpush.msrb.mxu1 %v592_v45  ;;  %1232 = vmatpush.msra.mxu3 %v592_v45  ;;  %v652_v45 = vld [vmem:[%s1922_s3 + $0x108] sm:$0xff] }
 0x24e   : > { %741 = vmatpush.msrb.mxu1 %v589_v44  ;;  %1233 = vmatpush.msra.mxu3 %v589_v44 }
 0x250   : > { %742 = vmatpush.msrb.mxu1 %v586_v43  ;;  %1234 = vmatpush.msra.mxu3 %v586_v43 }
 0x252   : > { %743 = vmatpush.msrb.mxu1 %v583_v42  ;;  %1235 = vmatpush.msra.mxu3 %v583_v42  ;;  %v650_v42 = vld [vmem:[%s1922_s3 + $0xf8] sm:$0xff] }
 0x253   : > { %v1620_v46 = vpop.f32.mrf.mxu2 }
 0x254   : > { %744 = vmatpush.msrb.mxu1 %v580_v41  ;;  %1236 = vmatpush.msra.mxu3 %v580_v41 }
 0x256   : > { %745 = vmatpush.msrb.mxu1 %v577_v40  ;;  %1237 = vmatpush.msra.mxu3 %v577_v40 }
 0x258   : > { %746 = vmatpush.msrb.mxu1 %v574_v39  ;;  %1238 = vmatpush.msra.mxu3 %v574_v39  ;;  %v648_v39 = vld [vmem:[%s1922_s3 + $0xe8] sm:$0xff] }
 0x25a   : > { %747 = vmatpush.msrb.mxu1 %v571_v38  ;;  %1239 = vmatpush.msra.mxu3 %v571_v38 }
 0x25b   : > { %v598_v47 = vpop.f32.mrf.mxu2 }
 0x25c   : > { %748 = vmatpush.msrb.mxu1 %v568_v37  ;;  %1240 = vmatpush.msra.mxu3 %v568_v37  ;;  %v646_v37 = vld [vmem:[%s1922_s3 + $0xd8] sm:$0xff] }
 0x25e   : > { %749 = vmatpush.msrb.mxu1 %v565_v34  ;;  %1241 = vmatpush.msra.mxu3 %v565_v34  ;;  %v644_v34 = vld [vmem:[%s1922_s3 + $0xc8] sm:$0xff] }
 0x260   : > { %750 = vmatpush.msrb.mxu1 %v562_v31  ;;  %1242 = vmatpush.msra.mxu3 %v562_v31  ;;  %v663_v31 = vld [vmem:[%s1922_s3 + $0x160] sm:$0xff] }
 0x262   : > { %751 = vmatpush.msrb.mxu1 %v559_v26  ;;  %1243 = vmatpush.msra.mxu3 %v559_v26 }
 0x263   : > { %v601_v48 = vpop.f32.mrf.mxu2 }
 0x264   : > { %752 = vmatpush.msrb.mxu1 %v556_v25  ;;  %1244 = vmatpush.msra.mxu3 %v556_v25  ;;  %v662_v25 = vld [vmem:[%s1922_s3 + $0x158] sm:$0xff] }
 0x266   : > { %753 = vmatpush.msrb.mxu1 %v553_v22  ;;  %1245 = vmatpush.msra.mxu3 %v553_v22  ;;  %v660_v22 = vld [vmem:[%s1922_s3 + $0x148] sm:$0xff] }
 0x268   : > { %754 = vmatpush.msrb.mxu1 %v1589_v19  ;;  %1246 = vmatpush.msra.mxu3 %v1589_v19  ;;  %v658_v19 = vld [vmem:[%s1922_s3 + $0x138] sm:$0xff] }
 0x26a   : > { %755 = vmatpush.msrb.mxu1 %v1583_v16  ;;  %1247 = vmatpush.msra.mxu3 %v1583_v16  ;;  %v656_v16 = vld [vmem:[%s1922_s3 + $0x128] sm:$0xff] }
 0x26b   : > { %v604_v50 = vpop.f32.mrf.mxu2  ;;  %771 = vmatmul.f32.vlgmr.msra.gmra.mxu3 %v629_v49  ;;  %756 = vmatmul.f32.vlgmr.msrb.gmra.mxu1 %v619_v54 }
 0x273   : > { %v607_v52 = vpop.f32.mrf.mxu2  ;;  %774 = vmatmul.f32.gmra.mxu3 %v631_v51  ;;  %759 = vmatmul.f32.gmra.mxu1 %v621_v57 }
 0x27b   : > { %v610_v55 = vpop.f32.mrf.mxu2  ;;  %777 = vmatmul.f32.gmra.mxu3 %v633_v53  ;;  %762 = vmatmul.f32.gmra.mxu1 %v623_v60 }
 0x283   : > { %v613_v58 = vpop.f32.mrf.mxu2  ;;  %780 = vmatmul.f32.gmra.mxu3 %v635_v56  ;;  %765 = vmatmul.f32.gmra.mxu1 %v625_v63 }
 0x28b   : > { %v616_v61 = vpop.f32.mrf.mxu2  ;;  %783 = vmatmul.f32.gmra.mxu3 %v637_v59  ;;  %768 = vmatmul.f32.gmra.mxu1 %v627_v2 }
 0x28c   : > { %837 = vmatpush.msrb.mxu0 %v616_v61  ;;  %1248 = vmatpush.msra.mxu1 %v616_v61 }
 0x28e   : > { %838 = vmatpush.msrb.mxu0 %v613_v58  ;;  %1249 = vmatpush.msra.mxu1 %v613_v58 }
 0x290   : > { %839 = vmatpush.msrb.mxu0 %v610_v55  ;;  %1250 = vmatpush.msra.mxu1 %v610_v55 }
 0x292   : > { %840 = vmatpush.msrb.mxu0 %v607_v52  ;;  %1251 = vmatpush.msra.mxu1 %v607_v52 }
 0x293   : > { %786 = vmatmul.f32.gmra.mxu3 %v639_v62 }
 0x294   : > { %841 = vmatpush.msrb.mxu0 %v604_v50  ;;  %1252 = vmatpush.msra.mxu1 %v604_v50 }
 0x296   : > { %842 = vmatpush.msrb.mxu0 %v601_v48  ;;  %1253 = vmatpush.msra.mxu1 %v601_v48 }
 0x298   : > { %843 = vmatpush.msrb.mxu0 %v598_v47  ;;  %1254 = vmatpush.msra.mxu1 %v598_v47 }
 0x29a   : > { %844 = vmatpush.msrb.mxu0 %v1620_v46  ;;  %1255 = vmatpush.msra.mxu1 %v1620_v46 }
 0x29b   : > { %1205 = vmatmul.msk.f32.vlgmr.msrb.gmra.mxu0 %vm667_vm5, %v620_v0  ;;  %789 = vmatmul.f32.gmra.mxu3 %v641_v1 }
 0x29c   : > { %1222 = vmatmul.msk.f32.vlgmr.msra.gmra.mxu1 %vm667_vm5, %v654_v13 }
 0x2a3   : > { %1206 = vmatmul.msk.f32.gmra.mxu0 %vm667_vm5, %v622_v3  ;;  %792 = vmatmul.f32.gmra.mxu3 %v643_v4 }
 0x2a4   : > { %1223 = vmatmul.msk.f32.gmra.mxu1 %vm667_vm5, %v656_v16 }
 0x2ab   : > { %1207 = vmatmul.msk.f32.gmra.mxu0 %vm667_vm5, %v624_v5  ;;  %795 = vmatmul.f32.gmra.mxu3 %v645_v6 }
 0x2ac   : > { %1224 = vmatmul.msk.f32.gmra.mxu1 %vm667_vm5, %v658_v19 }
 0x2b3   : > { %1208 = vmatmul.msk.f32.gmra.mxu0 %vm667_vm5, %v626_v7  ;;  %798 = vmatmul.f32.gmra.mxu3 %v647_v8 }
 0x2b4   : > { %1225 = vmatmul.msk.f32.gmra.mxu1 %vm667_vm5, %v660_v22 }
 0x2bb   : > { %1209 = vmatmul.msk.f32.gmra.mxu0 %vm667_vm5, %v628_v9  ;;  %801 = vmatmul.f32.gmra.mxu3 %v649_v10 }
 0x2bc   : > { %1226 = vmatmul.msk.f32.gmra.mxu1 %vm667_vm5, %v662_v25 }
 0x2c3   : > { %1210 = vmatmul.msk.f32.gmra.mxu0 %vm667_vm5, %v630_v11  ;;  %804 = vmatmul.f32.gmra.mxu3 %v651_v12 }
 0x2c4   : > { %1227 = vmatmul.msk.f32.gmra.mxu1 %vm667_vm5, %v664_v29 }
 0x2cb   : > { %1211 = vmatmul.msk.f32.gmra.mxu0 %vm667_vm5, %v632_v14  ;;  %807 = vmatmul.f32.gmra.mxu3 %v653_v15 }
 0x2cc   : > { %1228 = vmatmul.msk.f32.gmra.mxu1 %vm667_vm5, %v666_v33 }
 0x2d3   : > { %1212 = vmatmul.msk.f32.gmra.mxu0 %vm667_vm5, %v634_v17  ;;  %810 = vmatmul.f32.gmra.mxu3 %v655_v18 }
 0x2db   : > { %1213 = vmatmul.msk.f32.gmra.mxu0 %vm667_vm5, %v636_v20  ;;  %813 = vmatmul.f32.gmra.mxu3 %v657_v21 }
 0x2e3   : > { %1214 = vmatmul.msk.f32.gmra.mxu0 %vm667_vm5, %v638_v23  ;;  %816 = vmatmul.f32.gmra.mxu3 %v659_v24 }
 0x2e8   : > { %v757_v40 = vpop.f32.mrf.mxu1 }
 0x2eb   : > { %1215 = vmatmul.msk.f32.gmra.mxu0 %vm667_vm5, %v640_v27  ;;  %819 = vmatmul.f32.gmra.mxu3 %v661_v28 }
 0x2ee   : > { %v1758_v26 = vpop.f32.mrf.mxu3 }
 0x2f0   : > { %v760_v46 = vpop.f32.mrf.mxu1 }
 0x2f3   : > { %1216 = vmatmul.msk.f32.gmra.mxu0 %vm667_vm5, %v642_v30  ;;  %822 = vmatmul.f32.gmra.mxu3 %v663_v31 }
 0x2f6   : > { %v1771_v32 = vpop.f32.mrf.mxu3 }
 0x2f8   : > { %v763_v54 = vpop.f32.mrf.mxu1 }
 0x2fb   : > { %1217 = vmatmul.msk.f32.gmra.mxu0 %vm667_vm5, %v644_v34  ;;  %825 = vmatmul.f32.gmra.mxu3 %v665_v35 }
 0x2fe   : > { %v1784_v36 = vpop.f32.mrf.mxu3 }
 0x300   : > { %v766_v62 = vpop.f32.mrf.mxu1 }
 0x303   : > { %1218 = vmatmul.msk.f32.gmra.mxu0 %vm667_vm5, %v646_v37 }
 0x306   : > { %v1790_v38 = vpop.f32.mrf.mxu3 }
 0x308   : > { %v769_v6 = vpop.f32.mrf.mxu1 }
 0x30b   : > { %1219 = vmatmul.msk.f32.gmra.mxu0 %vm667_vm5, %v648_v39 }
 0x30e   : > { %v1796_v41 = vpop.f32.mrf.mxu3 }
 0x313   : > { %1220 = vmatmul.msk.f32.gmra.mxu0 %vm667_vm5, %v650_v42 }
 0x316   : > { %v1802_v43 = vpop.f32.mrf.mxu3 }
 0x318   : > { %v846_v44 = vpop.f32.mrf.mxu0 }
 0x319   : > { %v847_v47 = vadd.f32 %v846_v44, %v757_v40  ;;  %v897_v18 = vpop.f32.mrf.mxu1 }
 0x31b   : > { %1221 = vmatmul.msk.f32.gmra.mxu0 %vm667_vm5, %v652_v45  ;;  %vm918_vm6 = vcmp.ne.f32.partialorder %v847_v47, %v847_v47 }
 0x31c   : > { %v942_v48 = vsel %vm918_vm6, 0.0, %v847_v47 }
 0x31d   : > { %vm966_vm7 = vcmp.eq.f32.partialorder %v942_v48, inf }
 0x31e   : > { %v990_v49 = vsel %vm966_vm7, 3.4028235e+38, %v942_v48  ;;  %v1811_v50 = vpop.f32.mrf.mxu3 }
 0x31f   : > { %vm1014_vm8 = vcmp.eq.f32.partialorder %v990_v49, -inf }
 0x320   : > { %v849_v51 = vpop.f32.mrf.mxu0  ;;  %v1038_v52 = vsel %vm1014_vm8, -3.4028235e+38, %v990_v49 }
 0x321   : > { %1062 = vst.msk [vmem:[%s1813_s15] sm:$0xff] %vm258_vm0, %v1038_v52  ;;  %v850_v53 = vadd.f32 %v849_v51, %v760_v46  ;;  %v900_v25 = vpop.f32.mrf.mxu1 }
 0x323   : > { %vm919_vm9 = vcmp.ne.f32.partialorder %v850_v53, %v850_v53 }
 0x324   : > { %v943_v55 = vsel %vm919_vm9, 0.0, %v850_v53 }
 0x325   : > { %vm967_vm10 = vcmp.eq.f32.partialorder %v943_v55, inf }
 0x326   : > { %v991_v56 = vsel %vm967_vm10, 3.4028235e+38, %v943_v55  ;;  %v1817_v57 = vpop.f32.mrf.mxu3 }
 0x327   : > { %vm1015_vm11 = vcmp.eq.f32.partialorder %v991_v56, -inf }
 0x328   : > { %v852_v58 = vpop.f32.mrf.mxu0  ;;  %v1039_v59 = vsel %vm1015_vm11, -3.4028235e+38, %v991_v56 }
 0x329   : > { %1063 = vst.msk [vmem:[%s1813_s15 + $0x8] sm:$0xff] %vm258_vm0, %v1039_v59  ;;  %v853_v60 = vadd.f32 %v852_v58, %v763_v54  ;;  %v903_v35 = vpop.f32.mrf.mxu1 }
 0x32b   : > { %vm920_vm12 = vcmp.ne.f32.partialorder %v853_v60, %v853_v60 }
 0x32c   : > { %v944_v61 = vsel %vm920_vm12, 0.0, %v853_v60 }
 0x32d   : > { %vm968_vm13 = vcmp.eq.f32.partialorder %v944_v61, inf }
 0x32e   : > { %v992_v63 = vsel %vm968_vm13, 3.4028235e+38, %v944_v61  ;;  %v1821_v0 = vpop.f32.mrf.mxu3 }
 0x32f   : > { %vm1016_vm14 = vcmp.eq.f32.partialorder %v992_v63, -inf }
 0x330   : > { %v855_v1 = vpop.f32.mrf.mxu0  ;;  %v1040_v2 = vsel %vm1016_vm14, -3.4028235e+38, %v992_v63 }
 0x331   : > { %1064 = vst.msk [vmem:[%s1813_s15 + $0x10] sm:$0xff] %vm258_vm0, %v1040_v2  ;;  %v856_v3 = vadd.f32 %v855_v1, %v766_v62  ;;  %v906_v53 = vpop.f32.mrf.mxu1 }
 0x333   : > { %vm921_vm15 = vcmp.ne.f32.partialorder %v856_v3, %v856_v3 }
 0x334   : > { %v945_v4 = vsel %vm921_vm15, 0.0, %v856_v3 }
 0x335   : > { %vm969_vm1 = vcmp.eq.f32.partialorder %v945_v4, inf }
 0x336   : > { %v993_v5 = vsel %vm969_vm1, 3.4028235e+38, %v945_v4  ;;  %v1825_v7 = vpop.f32.mrf.mxu3 }
 0x337   : > { %vm1017_vm2 = vcmp.eq.f32.partialorder %v993_v5, -inf }
 0x338   : > { %v858_v8 = vpop.f32.mrf.mxu0  ;;  %v1041_v9 = vsel %vm1017_vm2, -3.4028235e+38, %v993_v5 }
 0x339   : > { %1065 = vst.msk [vmem:[%s1813_s15 + $0x18] sm:$0xff] %vm258_vm0, %v1041_v9  ;;  %v859_v10 = vadd.f32 %v858_v8, %v769_v6 }
 0x33b   : > { %vm922_vm3 = vcmp.ne.f32.partialorder %v859_v10, %v859_v10 }
 0x33c   : > { %v946_v11 = vsel %vm922_vm3, 0.0, %v859_v10 }
 0x33d   : > { %vm970_vm4 = vcmp.eq.f32.partialorder %v946_v11, inf }
 0x33e   : > { %v994_v12 = vsel %vm970_vm4, 3.4028235e+38, %v946_v11  ;;  %v1829_v13 = vpop.f32.mrf.mxu3 }
 0x33f   : > { %vm1018_vm5 = vcmp.eq.f32.partialorder %v994_v12, -inf }
 0x340   : > { %v861_v14 = vpop.f32.mrf.mxu0  ;;  %v1042_v15 = vsel %vm1018_vm5, -3.4028235e+38, %v994_v12 }
 0x341   : > { %v862_v16 = vadd.f32 %v861_v14, %v1758_v26  ;;  %1066 = vst.msk [vmem:[%s1813_s15 + $0x20] sm:$0xff] %vm258_vm0, %v1042_v15 }
 0x343   : > { %vm923_vm6 = vcmp.ne.f32.partialorder %v862_v16, %v862_v16 }
 0x344   : > { %v947_v17 = vsel %vm923_vm6, 0.0, %v862_v16 }
 0x345   : > { %vm971_vm7 = vcmp.eq.f32.partialorder %v947_v17, inf }
 0x346   : > { %v995_v19 = vsel %vm971_vm7, 3.4028235e+38, %v947_v17  ;;  %v1834_v20 = vpop.f32.mrf.mxu3 }
 0x347   : > { %vm1019_vm8 = vcmp.eq.f32.partialorder %v995_v19, -inf }
 0x348   : > { %v1043_v21 = vsel %vm1019_vm8, -3.4028235e+38, %v995_v19  ;;  %v864_v22 = vpop.f32.mrf.mxu0 }
 0x349   : > { %1067 = vst.msk [vmem:[%s1813_s15 + $0x28] sm:$0xff] %vm258_vm0, %v1043_v21  ;;  %v865_v23 = vadd.f32 %v864_v22, %v1771_v32 }
 0x34b   : > { %vm924_vm9 = vcmp.ne.f32.partialorder %v865_v23, %v865_v23 }
 0x34c   : > { %v948_v24 = vsel %vm924_vm9, 0.0, %v865_v23 }
 0x34d   : > { %vm972_vm10 = vcmp.eq.f32.partialorder %v948_v24, inf }
 0x34e   : > { %v996_v27 = vsel %vm972_vm10, 3.4028235e+38, %v948_v24  ;;  %v808_v28 = vpop.f32.mrf.mxu3 }
 0x34f   : > { %vm1020_vm11 = vcmp.eq.f32.partialorder %v996_v27, -inf  ;;  %v898_v26 = vadd.f32 %v897_v18, %v808_v28 }
 0x350   : > { %v1044_v29 = vsel %vm1020_vm11, -3.4028235e+38, %v996_v27  ;;  %v867_v30 = vpop.f32.mrf.mxu0 }
 0x351   : > { %1068 = vst.msk [vmem:[%s1813_s15 + $0x30] sm:$0xff] %vm258_vm0, %v1044_v29  ;;  %v868_v31 = vadd.f32 %v867_v30, %v1784_v36  ;;  %vm935_vm12 = vcmp.ne.f32.partialorder %v898_v26, %v898_v26 }
 0x352   : > { %v959_v33 = vsel %vm935_vm12, 0.0, %v898_v26 }
 0x353   : > { %vm925_vm13 = vcmp.ne.f32.partialorder %v868_v31, %v868_v31  ;;  %vm983_vm14 = vcmp.eq.f32.partialorder %v959_v33, inf }
 0x354   : > { %v949_v32 = vsel %vm925_vm13, 0.0, %v868_v31  ;;  %v1007_v34 = vsel %vm983_vm14, 3.4028235e+38, %v959_v33 }
 0x355   : > { %vm973_vm15 = vcmp.eq.f32.partialorder %v949_v32, inf  ;;  %vm1031_vm1 = vcmp.eq.f32.partialorder %v1007_v34, -inf }
 0x356   : > { %v997_v37 = vsel %vm973_vm15, 3.4028235e+38, %v949_v32  ;;  %v1055_v39 = vsel %vm1031_vm1, -3.4028235e+38, %v1007_v34  ;;  %v811_v40 = vpop.f32.mrf.mxu3 }
 0x357   : > { %vm1021_vm2 = vcmp.eq.f32.partialorder %v997_v37, -inf  ;;  %1079 = vst.msk [vmem:[%s1813_s15 + $0x88] sm:$0xff] %vm258_vm0, %v1055_v39  ;;  %v901_v42 = vadd.f32 %v900_v25, %v811_v40 }
 0x358   : > { %v1045_v44 = vsel %vm1021_vm2, -3.4028235e+38, %v997_v37  ;;  %v870_v45 = vpop.f32.mrf.mxu0 }
 0x359   : > { %1069 = vst.msk [vmem:[%s1813_s15 + $0x38] sm:$0xff] %vm258_vm0, %v1045_v44  ;;  %v871_v36 = vadd.f32 %v870_v45, %v1790_v38  ;;  %vm936_vm3 = vcmp.ne.f32.partialorder %v901_v42, %v901_v42 }
 0x35a   : > { %v960_v46 = vsel %vm936_vm3, 0.0, %v901_v42 }
 0x35b   : > { %vm926_vm4 = vcmp.ne.f32.partialorder %v871_v36, %v871_v36  ;;  %vm984_vm5 = vcmp.eq.f32.partialorder %v960_v46, inf }
 0x35c   : > { %v950_v47 = vsel %vm926_vm4, 0.0, %v871_v36  ;;  %v1008_v48 = vsel %vm984_vm5, 3.4028235e+38, %v960_v46 }
 0x35d   : > { %vm974_vm6 = vcmp.eq.f32.partialorder %v950_v47, inf  ;;  %vm1032_vm7 = vcmp.eq.f32.partialorder %v1008_v48, -inf }
 0x35e   : > { %v998_v49 = vsel %vm974_vm6, 3.4028235e+38, %v950_v47  ;;  %v1056_v51 = vsel %vm1032_vm7, -3.4028235e+38, %v1008_v48  ;;  %v814_v52 = vpop.f32.mrf.mxu3 }
 0x35f   : > { %vm1022_vm8 = vcmp.eq.f32.partialorder %v998_v49, -inf  ;;  %1080 = vst.msk [vmem:[%s1813_s15 + $0x90] sm:$0xff] %vm258_vm0, %v1056_v51  ;;  %v904_v54 = vadd.f32 %v903_v35, %v814_v52 }
 0x360   : > { %v1046_v55 = vsel %vm1022_vm8, -3.4028235e+38, %v998_v49  ;;  %v873_v38 = vpop.f32.mrf.mxu0 }
 0x361   : > { %1070 = vst.msk [vmem:[%s1813_s15 + $0x40] sm:$0xff] %vm258_vm0, %v1046_v55  ;;  %v874_v56 = vadd.f32 %v873_v38, %v1796_v41  ;;  %vm937_vm9 = vcmp.ne.f32.partialorder %v904_v54, %v904_v54  ;;  %v909_v41 = vpop.f32.mrf.mxu1 }
 0x362   : > { %v961_v58 = vsel %vm937_vm9, 0.0, %v904_v54 }
 0x363   : > { %vm927_vm10 = vcmp.ne.f32.partialorder %v874_v56, %v874_v56  ;;  %vm985_vm11 = vcmp.eq.f32.partialorder %v961_v58, inf }
 0x364   : > { %v951_v59 = vsel %vm927_vm10, 0.0, %v874_v56  ;;  %v1009_v60 = vsel %vm985_vm11, 3.4028235e+38, %v961_v58 }
 0x365   : > { %vm975_vm12 = vcmp.eq.f32.partialorder %v951_v59, inf  ;;  %vm1033_vm13 = vcmp.eq.f32.partialorder %v1009_v60, -inf }
 0x366   : > { %v999_v61 = vsel %vm975_vm12, 3.4028235e+38, %v951_v59  ;;  %v1057_v62 = vsel %vm1033_vm13, -3.4028235e+38, %v1009_v60  ;;  %v817_v63 = vpop.f32.mrf.mxu3 }
 0x367   : > { %vm1023_vm14 = vcmp.eq.f32.partialorder %v999_v61, -inf  ;;  %1081 = vst.msk [vmem:[%s1813_s15 + $0x98] sm:$0xff] %vm258_vm0, %v1057_v62  ;;  %v907_v1 = vadd.f32 %v906_v53, %v817_v63 }
 0x368   : > { %v1047_v2 = vsel %vm1023_vm14, -3.4028235e+38, %v999_v61  ;;  %v876_v3 = vpop.f32.mrf.mxu0 }
 0x369   : > { %1071 = vst.msk [vmem:[%s1813_s15 + $0x48] sm:$0xff] %vm258_vm0, %v1047_v2  ;;  %v877_v4 = vadd.f32 %v876_v3, %v1802_v43  ;;  %vm938_vm15 = vcmp.ne.f32.partialorder %v907_v1, %v907_v1  ;;  %v912_v17 = vpop.f32.mrf.mxu1 }
 0x36a   : > { %v962_v5 = vsel %vm938_vm15, 0.0, %v907_v1 }
 0x36b   : > { %vm928_vm1 = vcmp.ne.f32.partialorder %v877_v4, %v877_v4  ;;  %vm986_vm2 = vcmp.eq.f32.partialorder %v962_v5, inf }
 0x36c   : > { %v952_v6 = vsel %vm928_vm1, 0.0, %v877_v4  ;;  %v1010_v8 = vsel %vm986_vm2, 3.4028235e+38, %v962_v5 }
 0x36d   : > { %vm976_vm3 = vcmp.eq.f32.partialorder %v952_v6, inf  ;;  %vm1034_vm4 = vcmp.eq.f32.partialorder %v1010_v8, -inf }
 0x36e   : > { %v1000_v9 = vsel %vm976_vm3, 3.4028235e+38, %v952_v6  ;;  %v1058_v10 = vsel %vm1034_vm4, -3.4028235e+38, %v1010_v8  ;;  %v820_v11 = vpop.f32.mrf.mxu3 }
 0x36f   : > { %vm1024_vm5 = vcmp.eq.f32.partialorder %v1000_v9, -inf  ;;  %1082 = vst.msk [vmem:[%s1813_s15 + $0xa0] sm:$0xff] %vm258_vm0, %v1058_v10  ;;  %v910_v12 = vadd.f32 %v909_v41, %v820_v11 }
 0x370   : > { %v1048_v14 = vsel %vm1024_vm5, -3.4028235e+38, %v1000_v9  ;;  %v879_v15 = vpop.f32.mrf.mxu0 }
 0x371   : > { %1072 = vst.msk [vmem:[%s1813_s15 + $0x50] sm:$0xff] %vm258_vm0, %v1048_v14  ;;  %v880_v43 = vadd.f32 %v879_v15, %v1811_v50  ;;  %vm939_vm6 = vcmp.ne.f32.partialorder %v910_v12, %v910_v12  ;;  %v915_v30 = vpop.f32.mrf.mxu1 }
 0x372   : > { %v963_v16 = vsel %vm939_vm6, 0.0, %v910_v12 }
 0x373   : > { %vm929_vm7 = vcmp.ne.f32.partialorder %v880_v43, %v880_v43  ;;  %vm987_vm8 = vcmp.eq.f32.partialorder %v963_v16, inf }
 0x374   : > { %v953_v18 = vsel %vm929_vm7, 0.0, %v880_v43  ;;  %v1011_v19 = vsel %vm987_vm8, 3.4028235e+38, %v963_v16 }
 0x375   : > { %vm977_vm9 = vcmp.eq.f32.partialorder %v953_v18, inf  ;;  %vm1035_vm10 = vcmp.eq.f32.partialorder %v1011_v19, -inf }
 0x376   : > { %v1001_v21 = vsel %vm977_vm9, 3.4028235e+38, %v953_v18  ;;  %v1059_v22 = vsel %vm1035_vm10, -3.4028235e+38, %v1011_v19  ;;  %v823_v23 = vpop.f32.mrf.mxu3 }
 0x377   : > { %vm1025_vm11 = vcmp.eq.f32.partialorder %v1001_v21, -inf  ;;  %1083 = vst.msk [vmem:[%s1813_s15 + $0xa8] sm:$0xff] %vm258_vm0, %v1059_v22  ;;  %v913_v24 = vadd.f32 %v912_v17, %v823_v23 }
 0x378   : > { %v1049_v25 = vsel %vm1025_vm11, -3.4028235e+38, %v1001_v21  ;;  %v882_v27 = vpop.f32.mrf.mxu0 }
 0x379   : > { %1073 = vst.msk [vmem:[%s1813_s15 + $0x58] sm:$0xff] %vm258_vm0, %v1049_v25  ;;  %v883_v50 = vadd.f32 %v882_v27, %v1817_v57  ;;  %vm940_vm12 = vcmp.ne.f32.partialorder %v913_v24, %v913_v24 }
 0x37a   : > { %v964_v28 = vsel %vm940_vm12, 0.0, %v913_v24 }
 0x37b   : > { %vm930_vm13 = vcmp.ne.f32.partialorder %v883_v50, %v883_v50  ;;  %vm988_vm14 = vcmp.eq.f32.partialorder %v964_v28, inf }
 0x37c   : > { %v954_v26 = vsel %vm930_vm13, 0.0, %v883_v50  ;;  %v1012_v29 = vsel %vm988_vm14, 3.4028235e+38, %v964_v28 }
 0x37d   : > { %vm978_vm15 = vcmp.eq.f32.partialorder %v954_v26, inf  ;;  %vm1036_vm1 = vcmp.eq.f32.partialorder %v1012_v29, -inf }
 0x37e   : > { %v1002_v31 = vsel %vm978_vm15, 3.4028235e+38, %v954_v26  ;;  %v1060_v33 = vsel %vm1036_vm1, -3.4028235e+38, %v1012_v29  ;;  %v826_v32 = vpop.f32.mrf.mxu3 }
 0x37f   : > { %vm1026_vm2 = vcmp.eq.f32.partialorder %v1002_v31, -inf  ;;  %1084 = vst.msk [vmem:[%s1813_s15 + $0xb0] sm:$0xff] %vm258_vm0, %v1060_v33  ;;  %v916_v34 = vadd.f32 %v915_v30, %v826_v32 }
 0x380   : > { %v1050_v35 = vsel %vm1026_vm2, -3.4028235e+38, %v1002_v31  ;;  %v885_v57 = vpop.f32.mrf.mxu0 }
 0x381   : > { %1074 = vst.msk [vmem:[%s1813_s15 + $0x60] sm:$0xff] %vm258_vm0, %v1050_v35  ;;  %v886_v37 = vadd.f32 %v885_v57, %v1821_v0  ;;  %vm941_vm3 = vcmp.ne.f32.partialorder %v916_v34, %v916_v34 }
 0x382   : > { %v965_v39 = vsel %vm941_vm3, 0.0, %v916_v34 }
 0x383   : > { %vm931_vm4 = vcmp.ne.f32.partialorder %v886_v37, %v886_v37  ;;  %vm989_vm5 = vcmp.eq.f32.partialorder %v965_v39, inf }
 0x384   : > { %v955_v40 = vsel %vm931_vm4, 0.0, %v886_v37  ;;  %v1013_v42 = vsel %vm989_vm5, 3.4028235e+38, %v965_v39 }
 0x385   : > { %vm979_vm6 = vcmp.eq.f32.partialorder %v955_v40, inf  ;;  %vm1037_vm7 = vcmp.eq.f32.partialorder %v1013_v42, -inf }
 0x386   : > { %v1003_v44 = vsel %vm979_vm6, 3.4028235e+38, %v955_v40  ;;  %v1061_v45 = vsel %vm1037_vm7, -3.4028235e+38, %v1013_v42 }
 0x387   : > { %vm1027_vm8 = vcmp.eq.f32.partialorder %v1003_v44, -inf  ;;  %1085 = vst.msk [vmem:[%s1813_s15 + $0xb8] sm:$0xff] %vm258_vm0, %v1061_v45 }
 0x388   : > { %v1051_v36 = vsel %vm1027_vm8, -3.4028235e+38, %v1003_v44  ;;  %v888_v46 = vpop.f32.mrf.mxu0 }
 0x389   : > { %1075 = vst.msk [vmem:[%s1813_s15 + $0x68] sm:$0xff] %vm258_vm0, %v1051_v36  ;;  %v889_v0 = vadd.f32 %v888_v46, %v1825_v7 }
 0x38b   : > { %vm932_vm9 = vcmp.ne.f32.partialorder %v889_v0, %v889_v0 }
 0x38c   : > { %v956_v47 = vsel %vm932_vm9, 0.0, %v889_v0 }
 0x38d   : > { %vm980_vm10 = vcmp.eq.f32.partialorder %v956_v47, inf }
 0x38e   : > { %v1004_v48 = vsel %vm980_vm10, 3.4028235e+38, %v956_v47 }
 0x38f   : > { %vm1028_vm11 = vcmp.eq.f32.partialorder %v1004_v48, -inf }
 0x390   : > { %v1052_v49 = vsel %vm1028_vm11, -3.4028235e+38, %v1004_v48  ;;  %v891_v51 = vpop.f32.mrf.mxu0 }
 0x391   : > { %1076 = vst.msk [vmem:[%s1813_s15 + $0x70] sm:$0xff] %vm258_vm0, %v1052_v49  ;;  %v892_v52 = vadd.f32 %v891_v51, %v1829_v13 }
 0x393   : > { %vm933_vm12 = vcmp.ne.f32.partialorder %v892_v52, %v892_v52 }
 0x394   : > { %v957_v53 = vsel %vm933_vm12, 0.0, %v892_v52 }
 0x395   : > { %vm981_vm13 = vcmp.eq.f32.partialorder %v957_v53, inf }
 0x396   : > { %v1005_v54 = vsel %vm981_vm13, 3.4028235e+38, %v957_v53 }
 0x397   : > { %vm1029_vm14 = vcmp.eq.f32.partialorder %v1005_v54, -inf }
 0x398   : > { %v1053_v7 = vsel %vm1029_vm14, -3.4028235e+38, %v1005_v54  ;;  %v894_v55 = vpop.f32.mrf.mxu0 }
 0x399   : > { %1077 = vst.msk [vmem:[%s1813_s15 + $0x78] sm:$0xff] %vm258_vm0, %v1053_v7  ;;  %v895_v38 = vadd.f32 %v894_v55, %v1834_v20 }
 0x39b   : > { %vm934_vm15 = vcmp.ne.f32.partialorder %v895_v38, %v895_v38 }
 0x39c   : > { %v958_v13 = vsel %vm934_vm15, 0.0, %v895_v38 }
 0x39d   : > { %vm982_vm1 = vcmp.eq.f32.partialorder %v958_v13, inf }
 0x39e   : > { %v1006_v56 = vsel %vm982_vm1, 3.4028235e+38, %v958_v13 }
 0x39f   : > { %vm1030_vm2 = vcmp.eq.f32.partialorder %v1006_v56, -inf }
 0x3a0   : > { %v1054_v58 = vsel %vm1030_vm2, -3.4028235e+38, %v1006_v56 }
 0x3a1   : > { %1078 = vst.msk [vmem:[%s1813_s15 + $0x80] sm:$0xff] %vm258_vm0, %v1054_v58 }
 0x3a2   : > { %1327 = shalt.err (!%p1324_p3)
}
 0x3a3   : > { %s1364_s11 = smov 128   ;;  %s1365_s15 = smov 8  }
 0x3a4   : > { %1259 = dma.vmem_to_hbm [thread:$0]  (%p1439_p5), %s1100_s20, 3072, %s1102_s26, %s1087_s25, %s1364_s11, %s1364_s11, %s1365_s15  }
 0x3a5 PF: > { %p1265_p4 = scmp.ge.s32.totalorder %s1362_s24, 2  ;;  %s1116_s16 = sand.u32 1, %s1350_s21  }
 0x3a6   : > { %s1117_s17 = scalar_lea.sflag [#allocation3], %s1116_s16 }
 0x3a7   : > { %p1262_p7 = pnand %p1265_p4, %p1443_p6 }
 0x3a9   : > { %p1263_p8 = pneg %p1262_p7 }
 0x3ab   : > { %1345 = dma.done.wait (%p1263_p8), %s1117_s17, 3072  }
 0x3ac   : > { %1347 = vsyncadd (%p1263_p8), %s1117_s17, 4294964224  ;;  %p16_p9 = scmp.ge.s32.totalorder %s1426_s27, 4   ;;  %s1928_s21 = smov %s1354_s22 }
 0x3ad   : > { %s1929_s22 = smov %s1358_s23  ;;  %s1930_s23 = smov %s1437_s30 }
 0x3ae   : > { %s1931_s24 = smov %s1426_s27  ;;  %18 = sbr.rel (!%p16_p9) target bundleno = 3 (0x3), region = 79 }
 0x3b3   :  { %1123 = vsyncpa [#allocation3], 1 }
 0x3b4   :  { %1125 = vsyncpa [#allocation3 + $0x1], 1 }

</bundles_post_ra>
